<compile_context>
chip_gen: v7x
topology: tpu7x:2x2x1
jax: 0.10.0
libtpu: 0.0.40
codegen_flags: <defaults>
</compile_context>

<pallas_src>
import jax
import jax.numpy as jnp
import numpy as np
from jax.experimental import pallas as pl
from jax.experimental.pallas import tpu as pltpu

# ---------------- configuration (small, consistent with the module) -------------
B, C, T, F = 2, 4, 16, 16         # batch, channels, time frames, freq bins
KT, KF = 2, 3                     # kernel k = (k_t, k_f); stride = (1, 2)
T_PAD = T + KT - 1                # causal pad of (KT-1) zeros at the start of time
F_OUT = (F - KF) // 2 + 1         # stride-2 VALID conv over freq
K = C * KT * KF                   # contraction length (ci, kt, kf)
N = B * T * F_OUT                 # lane-dense output width per channel row
EPS = 1e-5                        # BatchNorm2d default eps


# =================== fused kernel: conv2d + batchnorm + PReLU ====================
def conv2d_unit_kernel(w_ref, p_ref, b_ref, g_ref, beta_ref, a_ref, o_ref):
    # w_ref    : (C, K)  conv weights, columns ordered (ci, kt, kf)          (VMEM)
    # p_ref    : (K, N)  im2col patches, columns ordered (b, t, f_out)       (VMEM)
    # b_ref, g_ref, beta_ref, a_ref : (C, 1) per-channel bias/gamma/beta/alpha
    # o_ref    : (C, N)
    w = w_ref[...]
    p = p_ref[...]

    # Contraction vectorized over all output channels: 24 broadcast FMAs on the VPU.
    acc = jnp.zeros((C, N), jnp.float32)
    for k in range(K):
        acc = acc + w[:, k:k + 1] * p[k:k + 1, :]
    y = acc + b_ref[...]

    # BatchNorm2d forward with batch statistics (per channel over B,T,F_out = one row;
    # biased variance, like torch in training mode), then affine.
    mean = jnp.mean(y, axis=1, keepdims=True)
    var = jnp.mean((y - mean) ** 2, axis=1, keepdims=True)
    z = g_ref[...] * ((y - mean) * jax.lax.rsqrt(var + EPS)) + beta_ref[...]

    # PReLU(c): max(0, z) + alpha_c * min(0, z)
    o_ref[...] = jnp.where(z >= 0.0, z, a_ref[...] * z)


@jax.jit
def conv2d_unit_forward(x, params):
    """x: (B, C, T, F) -> (B, C, T, F_OUT)."""
    # Causal time pad (ConstantPad2d((0,0,KT-1,0))).
    xp = jnp.pad(x, ((0, 0), (0, 0), (KT - 1, 0), (0, 0)))        # (B, C, T_PAD, F)

    # im2col (static slices only): rows (ci, kt, kf), cols (b, t, f_out).
    cols = []
    for kt in range(KT):
        for kf in range(KF):
            cols.append(xp[:, :, kt:kt + T, kf::2][..., :F_OUT])  # (B, C, T, F_OUT)
    patches = jnp.stack(cols, axis=0)                             # (KT*KF, B, C, T, F_OUT)
    patches = jnp.transpose(patches, (2, 0, 1, 3, 4))             # (C, KT*KF, B, T, F_OUT)
    patches = patches.reshape(K, N)

    w2 = params["w"].reshape(C, K)                                # rows co, cols (ci,kt,kf)
    col = lambda v: v.reshape(C, 1).astype(jnp.float32)

    vmem = pl.BlockSpec(memory_space=pltpu.MemorySpace.VMEM)
    out_cn = pl.pallas_call(
        conv2d_unit_kernel,
        out_shape=jax.ShapeDtypeStruct((C, N), jnp.float32),
        in_specs=[vmem] * 6,
        out_specs=vmem,
    )(w2, patches, col(params["b"]), col(params["gamma"]),
      col(params["beta"]), col(params["alpha"]))

    out = out_cn.reshape(C, B, T, F_OUT)                          # (C, B, T, F_OUT)
    return jnp.transpose(out, (1, 0, 2, 3))                       # (B, C, T, F_OUT)


# =================== pure-JAX reference (for correctness check) ==================
def reference_forward(x, p):
    xp = jnp.pad(x, ((0, 0), (0, 0), (KT - 1, 0), (0, 0)))
    y = jax.lax.conv_general_dilated(
        xp, p["w"], window_strides=(1, 2), padding="VALID",
        dimension_numbers=("NCHW", "OIHW", "NCHW"),
        precision=jax.lax.Precision.HIGHEST)
    y = y + p["b"][None, :, None, None]
    mean = y.mean(axis=(0, 2, 3), keepdims=True)
    var = ((y - mean) ** 2).mean(axis=(0, 2, 3), keepdims=True)
    z = (y - mean) * jax.lax.rsqrt(var + EPS)
    z = p["gamma"][None, :, None, None] * z + p["beta"][None, :, None, None]
    a = p["alpha"][None, :, None, None]
    return jnp.where(z >= 0, z, a * z)


def init_params(key):
    k1, k2, k3, k4, k5 = jax.random.split(key, 5)
    fan_in = C * KT * KF
    bound = 1.0 / np.sqrt(fan_in)
    return dict(
        w=jax.random.uniform(k1, (C, C, KT, KF), jnp.float32, -bound, bound),
        b=jax.random.uniform(k2, (C,), jnp.float32, -bound, bound),
        gamma=1.0 + 0.1 * jax.random.normal(k3, (C,), jnp.float32),
        beta=0.1 * jax.random.normal(k4, (C,), jnp.float32),
        alpha=0.25 + 0.05 * jax.random.normal(k5, (C,), jnp.float32),
    )


# ================================== main ========================================
if __name__ == "__main__":
    key = jax.random.PRNGKey(0)
    kx, kp = jax.random.split(key, 2)
    x = jax.random.normal(kx, (B, C, T, F), jnp.float32)
    params = init_params(kp)

    out = conv2d_unit_forward(x, params)
    out = jax.block_until_ready(out)
    assert out.shape == (B, C, T, F_OUT), out.shape

    ref = reference_forward(x, params)
    np.testing.assert_allclose(np.asarray(out), np.asarray(ref), rtol=1e-4, atol=1e-4)
    print("KERNEL_OK")
</pallas_src>

<mosaic_0001>
module attributes {stable_mosaic.version = 11 : i64} {
  func.func @conv2d_unit_kernel(%arg0: memref<4x24xf32, #tpu.memory_space<vmem>>, %arg1: memref<24x224xf32, #tpu.memory_space<vmem>>, %arg2: memref<4x1xf32, #tpu.memory_space<vmem>>, %arg3: memref<4x1xf32, #tpu.memory_space<vmem>>, %arg4: memref<4x1xf32, #tpu.memory_space<vmem>>, %arg5: memref<4x1xf32, #tpu.memory_space<vmem>>, %arg6: memref<4x224xf32, #tpu.memory_space<vmem>>) attributes {dimension_semantics = [], scalar_prefetch = 0 : i64, scratch_operands = 0 : i64, tpu.core_type = #tpu.core_type<tc>} {
    %c0 = arith.constant 0 : index
    %c0_0 = arith.constant 0 : index
    %0 = vector.load %arg0[%c0, %c0_0] : memref<4x24xf32, #tpu.memory_space<vmem>>, vector<4x24xf32>
    %c0_1 = arith.constant 0 : index
    %c0_2 = arith.constant 0 : index
    %1 = vector.load %arg1[%c0_1, %c0_2] : memref<24x224xf32, #tpu.memory_space<vmem>>, vector<24x224xf32>
    %cst = arith.constant 0.000000e+00 : f32
    %2 = vector.broadcast %cst : f32 to vector<4x224xf32>
    %3 = vector.extract_strided_slice %0 {offsets = [0, 0], sizes = [4, 1], strides = [1, 1]} : vector<4x24xf32> to vector<4x1xf32>
    %4 = vector.extract_strided_slice %1 {offsets = [0, 0], sizes = [1, 224], strides = [1, 1]} : vector<24x224xf32> to vector<1x224xf32>
    %5 = vector.broadcast %3 : vector<4x1xf32> to vector<4x224xf32>
    %6 = vector.broadcast %4 : vector<1x224xf32> to vector<4x224xf32>
    %7 = arith.mulf %5, %6 : vector<4x224xf32>
    %8 = arith.addf %2, %7 : vector<4x224xf32>
    %9 = vector.extract_strided_slice %0 {offsets = [0, 1], sizes = [4, 1], strides = [1, 1]} : vector<4x24xf32> to vector<4x1xf32>
    %10 = vector.extract_strided_slice %1 {offsets = [1, 0], sizes = [1, 224], strides = [1, 1]} : vector<24x224xf32> to vector<1x224xf32>
    %11 = vector.broadcast %9 : vector<4x1xf32> to vector<4x224xf32>
    %12 = vector.broadcast %10 : vector<1x224xf32> to vector<4x224xf32>
    %13 = arith.mulf %11, %12 : vector<4x224xf32>
    %14 = arith.addf %8, %13 : vector<4x224xf32>
    %15 = vector.extract_strided_slice %0 {offsets = [0, 2], sizes = [4, 1], strides = [1, 1]} : vector<4x24xf32> to vector<4x1xf32>
    %16 = vector.extract_strided_slice %1 {offsets = [2, 0], sizes = [1, 224], strides = [1, 1]} : vector<24x224xf32> to vector<1x224xf32>
    %17 = vector.broadcast %15 : vector<4x1xf32> to vector<4x224xf32>
    %18 = vector.broadcast %16 : vector<1x224xf32> to vector<4x224xf32>
    %19 = arith.mulf %17, %18 : vector<4x224xf32>
    %20 = arith.addf %14, %19 : vector<4x224xf32>
    %21 = vector.extract_strided_slice %0 {offsets = [0, 3], sizes = [4, 1], strides = [1, 1]} : vector<4x24xf32> to vector<4x1xf32>
    %22 = vector.extract_strided_slice %1 {offsets = [3, 0], sizes = [1, 224], strides = [1, 1]} : vector<24x224xf32> to vector<1x224xf32>
    %23 = vector.broadcast %21 : vector<4x1xf32> to vector<4x224xf32>
    %24 = vector.broadcast %22 : vector<1x224xf32> to vector<4x224xf32>
    %25 = arith.mulf %23, %24 : vector<4x224xf32>
    %26 = arith.addf %20, %25 : vector<4x224xf32>
    %27 = vector.extract_strided_slice %0 {offsets = [0, 4], sizes = [4, 1], strides = [1, 1]} : vector<4x24xf32> to vector<4x1xf32>
    %28 = vector.extract_strided_slice %1 {offsets = [4, 0], sizes = [1, 224], strides = [1, 1]} : vector<24x224xf32> to vector<1x224xf32>
    %29 = vector.broadcast %27 : vector<4x1xf32> to vector<4x224xf32>
    %30 = vector.broadcast %28 : vector<1x224xf32> to vector<4x224xf32>
    %31 = arith.mulf %29, %30 : vector<4x224xf32>
    %32 = arith.addf %26, %31 : vector<4x224xf32>
    %33 = vector.extract_strided_slice %0 {offsets = [0, 5], sizes = [4, 1], strides = [1, 1]} : vector<4x24xf32> to vector<4x1xf32>
    %34 = vector.extract_strided_slice %1 {offsets = [5, 0], sizes = [1, 224], strides = [1, 1]} : vector<24x224xf32> to vector<1x224xf32>
    %35 = vector.broadcast %33 : vector<4x1xf32> to vector<4x224xf32>
    %36 = vector.broadcast %34 : vector<1x224xf32> to vector<4x224xf32>
    %37 = arith.mulf %35, %36 : vector<4x224xf32>
    %38 = arith.addf %32, %37 : vector<4x224xf32>
    %39 = vector.extract_strided_slice %0 {offsets = [0, 6], sizes = [4, 1], strides = [1, 1]} : vector<4x24xf32> to vector<4x1xf32>
    %40 = vector.extract_strided_slice %1 {offsets = [6, 0], sizes = [1, 224], strides = [1, 1]} : vector<24x224xf32> to vector<1x224xf32>
    %41 = vector.broadcast %39 : vector<4x1xf32> to vector<4x224xf32>
    %42 = vector.broadcast %40 : vector<1x224xf32> to vector<4x224xf32>
    %43 = arith.mulf %41, %42 : vector<4x224xf32>
    %44 = arith.addf %38, %43 : vector<4x224xf32>
    %45 = vector.extract_strided_slice %0 {offsets = [0, 7], sizes = [4, 1], strides = [1, 1]} : vector<4x24xf32> to vector<4x1xf32>
    %46 = vector.extract_strided_slice %1 {offsets = [7, 0], sizes = [1, 224], strides = [1, 1]} : vector<24x224xf32> to vector<1x224xf32>
    %47 = vector.broadcast %45 : vector<4x1xf32> to vector<4x224xf32>
    %48 = vector.broadcast %46 : vector<1x224xf32> to vector<4x224xf32>
    %49 = arith.mulf %47, %48 : vector<4x224xf32>
    %50 = arith.addf %44, %49 : vector<4x224xf32>
    %51 = vector.extract_strided_slice %0 {offsets = [0, 8], sizes = [4, 1], strides = [1, 1]} : vector<4x24xf32> to vector<4x1xf32>
    %52 = vector.extract_strided_slice %1 {offsets = [8, 0], sizes = [1, 224], strides = [1, 1]} : vector<24x224xf32> to vector<1x224xf32>
    %53 = vector.broadcast %51 : vector<4x1xf32> to vector<4x224xf32>
    %54 = vector.broadcast %52 : vector<1x224xf32> to vector<4x224xf32>
    %55 = arith.mulf %53, %54 : vector<4x224xf32>
    %56 = arith.addf %50, %55 : vector<4x224xf32>
    %57 = vector.extract_strided_slice %0 {offsets = [0, 9], sizes = [4, 1], strides = [1, 1]} : vector<4x24xf32> to vector<4x1xf32>
    %58 = vector.extract_strided_slice %1 {offsets = [9, 0], sizes = [1, 224], strides = [1, 1]} : vector<24x224xf32> to vector<1x224xf32>
    %59 = vector.broadcast %57 : vector<4x1xf32> to vector<4x224xf32>
    %60 = vector.broadcast %58 : vector<1x224xf32> to vector<4x224xf32>
    %61 = arith.mulf %59, %60 : vector<4x224xf32>
    %62 = arith.addf %56, %61 : vector<4x224xf32>
    %63 = vector.extract_strided_slice %0 {offsets = [0, 10], sizes = [4, 1], strides = [1, 1]} : vector<4x24xf32> to vector<4x1xf32>
    %64 = vector.extract_strided_slice %1 {offsets = [10, 0], sizes = [1, 224], strides = [1, 1]} : vector<24x224xf32> to vector<1x224xf32>
    %65 = vector.broadcast %63 : vector<4x1xf32> to vector<4x224xf32>
    %66 = vector.broadcast %64 : vector<1x224xf32> to vector<4x224xf32>
    %67 = arith.mulf %65, %66 : vector<4x224xf32>
    %68 = arith.addf %62, %67 : vector<4x224xf32>
    %69 = vector.extract_strided_slice %0 {offsets = [0, 11], sizes = [4, 1], strides = [1, 1]} : vector<4x24xf32> to vector<4x1xf32>
    %70 = vector.extract_strided_slice %1 {offsets = [11, 0], sizes = [1, 224], strides = [1, 1]} : vector<24x224xf32> to vector<1x224xf32>
    %71 = vector.broadcast %69 : vector<4x1xf32> to vector<4x224xf32>
    %72 = vector.broadcast %70 : vector<1x224xf32> to vector<4x224xf32>
    %73 = arith.mulf %71, %72 : vector<4x224xf32>
    %74 = arith.addf %68, %73 : vector<4x224xf32>
    %75 = vector.extract_strided_slice %0 {offsets = [0, 12], sizes = [4, 1], strides = [1, 1]} : vector<4x24xf32> to vector<4x1xf32>
    %76 = vector.extract_strided_slice %1 {offsets = [12, 0], sizes = [1, 224], strides = [1, 1]} : vector<24x224xf32> to vector<1x224xf32>
    %77 = vector.broadcast %75 : vector<4x1xf32> to vector<4x224xf32>
    %78 = vector.broadcast %76 : vector<1x224xf32> to vector<4x224xf32>
    %79 = arith.mulf %77, %78 : vector<4x224xf32>
    %80 = arith.addf %74, %79 : vector<4x224xf32>
    %81 = vector.extract_strided_slice %0 {offsets = [0, 13], sizes = [4, 1], strides = [1, 1]} : vector<4x24xf32> to vector<4x1xf32>
    %82 = vector.extract_strided_slice %1 {offsets = [13, 0], sizes = [1, 224], strides = [1, 1]} : vector<24x224xf32> to vector<1x224xf32>
    %83 = vector.broadcast %81 : vector<4x1xf32> to vector<4x224xf32>
    %84 = vector.broadcast %82 : vector<1x224xf32> to vector<4x224xf32>
    %85 = arith.mulf %83, %84 : vector<4x224xf32>
    %86 = arith.addf %80, %85 : vector<4x224xf32>
    %87 = vector.extract_strided_slice %0 {offsets = [0, 14], sizes = [4, 1], strides = [1, 1]} : vector<4x24xf32> to vector<4x1xf32>
    %88 = vector.extract_strided_slice %1 {offsets = [14, 0], sizes = [1, 224], strides = [1, 1]} : vector<24x224xf32> to vector<1x224xf32>
    %89 = vector.broadcast %87 : vector<4x1xf32> to vector<4x224xf32>
    %90 = vector.broadcast %88 : vector<1x224xf32> to vector<4x224xf32>
    %91 = arith.mulf %89, %90 : vector<4x224xf32>
    %92 = arith.addf %86, %91 : vector<4x224xf32>
    %93 = vector.extract_strided_slice %0 {offsets = [0, 15], sizes = [4, 1], strides = [1, 1]} : vector<4x24xf32> to vector<4x1xf32>
    %94 = vector.extract_strided_slice %1 {offsets = [15, 0], sizes = [1, 224], strides = [1, 1]} : vector<24x224xf32> to vector<1x224xf32>
    %95 = vector.broadcast %93 : vector<4x1xf32> to vector<4x224xf32>
    %96 = vector.broadcast %94 : vector<1x224xf32> to vector<4x224xf32>
    %97 = arith.mulf %95, %96 : vector<4x224xf32>
    %98 = arith.addf %92, %97 : vector<4x224xf32>
    %99 = vector.extract_strided_slice %0 {offsets = [0, 16], sizes = [4, 1], strides = [1, 1]} : vector<4x24xf32> to vector<4x1xf32>
    %100 = vector.extract_strided_slice %1 {offsets = [16, 0], sizes = [1, 224], strides = [1, 1]} : vector<24x224xf32> to vector<1x224xf32>
    %101 = vector.broadcast %99 : vector<4x1xf32> to vector<4x224xf32>
    %102 = vector.broadcast %100 : vector<1x224xf32> to vector<4x224xf32>
    %103 = arith.mulf %101, %102 : vector<4x224xf32>
    %104 = arith.addf %98, %103 : vector<4x224xf32>
    %105 = vector.extract_strided_slice %0 {offsets = [0, 17], sizes = [4, 1], strides = [1, 1]} : vector<4x24xf32> to vector<4x1xf32>
    %106 = vector.extract_strided_slice %1 {offsets = [17, 0], sizes = [1, 224], strides = [1, 1]} : vector<24x224xf32> to vector<1x224xf32>
    %107 = vector.broadcast %105 : vector<4x1xf32> to vector<4x224xf32>
    %108 = vector.broadcast %106 : vector<1x224xf32> to vector<4x224xf32>
    %109 = arith.mulf %107, %108 : vector<4x224xf32>
    %110 = arith.addf %104, %109 : vector<4x224xf32>
    %111 = vector.extract_strided_slice %0 {offsets = [0, 18], sizes = [4, 1], strides = [1, 1]} : vector<4x24xf32> to vector<4x1xf32>
    %112 = vector.extract_strided_slice %1 {offsets = [18, 0], sizes = [1, 224], strides = [1, 1]} : vector<24x224xf32> to vector<1x224xf32>
    %113 = vector.broadcast %111 : vector<4x1xf32> to vector<4x224xf32>
    %114 = vector.broadcast %112 : vector<1x224xf32> to vector<4x224xf32>
    %115 = arith.mulf %113, %114 : vector<4x224xf32>
    %116 = arith.addf %110, %115 : vector<4x224xf32>
    %117 = vector.extract_strided_slice %0 {offsets = [0, 19], sizes = [4, 1], strides = [1, 1]} : vector<4x24xf32> to vector<4x1xf32>
    %118 = vector.extract_strided_slice %1 {offsets = [19, 0], sizes = [1, 224], strides = [1, 1]} : vector<24x224xf32> to vector<1x224xf32>
    %119 = vector.broadcast %117 : vector<4x1xf32> to vector<4x224xf32>
    %120 = vector.broadcast %118 : vector<1x224xf32> to vector<4x224xf32>
    %121 = arith.mulf %119, %120 : vector<4x224xf32>
    %122 = arith.addf %116, %121 : vector<4x224xf32>
    %123 = vector.extract_strided_slice %0 {offsets = [0, 20], sizes = [4, 1], strides = [1, 1]} : vector<4x24xf32> to vector<4x1xf32>
    %124 = vector.extract_strided_slice %1 {offsets = [20, 0], sizes = [1, 224], strides = [1, 1]} : vector<24x224xf32> to vector<1x224xf32>
    %125 = vector.broadcast %123 : vector<4x1xf32> to vector<4x224xf32>
    %126 = vector.broadcast %124 : vector<1x224xf32> to vector<4x224xf32>
    %127 = arith.mulf %125, %126 : vector<4x224xf32>
    %128 = arith.addf %122, %127 : vector<4x224xf32>
    %129 = vector.extract_strided_slice %0 {offsets = [0, 21], sizes = [4, 1], strides = [1, 1]} : vector<4x24xf32> to vector<4x1xf32>
    %130 = vector.extract_strided_slice %1 {offsets = [21, 0], sizes = [1, 224], strides = [1, 1]} : vector<24x224xf32> to vector<1x224xf32>
    %131 = vector.broadcast %129 : vector<4x1xf32> to vector<4x224xf32>
    %132 = vector.broadcast %130 : vector<1x224xf32> to vector<4x224xf32>
    %133 = arith.mulf %131, %132 : vector<4x224xf32>
    %134 = arith.addf %128, %133 : vector<4x224xf32>
    %135 = vector.extract_strided_slice %0 {offsets = [0, 22], sizes = [4, 1], strides = [1, 1]} : vector<4x24xf32> to vector<4x1xf32>
    %136 = vector.extract_strided_slice %1 {offsets = [22, 0], sizes = [1, 224], strides = [1, 1]} : vector<24x224xf32> to vector<1x224xf32>
    %137 = vector.broadcast %135 : vector<4x1xf32> to vector<4x224xf32>
    %138 = vector.broadcast %136 : vector<1x224xf32> to vector<4x224xf32>
    %139 = arith.mulf %137, %138 : vector<4x224xf32>
    %140 = arith.addf %134, %139 : vector<4x224xf32>
    %141 = vector.extract_strided_slice %0 {offsets = [0, 23], sizes = [4, 1], strides = [1, 1]} : vector<4x24xf32> to vector<4x1xf32>
    %142 = vector.extract_strided_slice %1 {offsets = [23, 0], sizes = [1, 224], strides = [1, 1]} : vector<24x224xf32> to vector<1x224xf32>
    %143 = vector.broadcast %141 : vector<4x1xf32> to vector<4x224xf32>
    %144 = vector.broadcast %142 : vector<1x224xf32> to vector<4x224xf32>
    %145 = arith.mulf %143, %144 : vector<4x224xf32>
    %146 = arith.addf %140, %145 : vector<4x224xf32>
    %c0_3 = arith.constant 0 : index
    %c0_4 = arith.constant 0 : index
    %147 = vector.load %arg2[%c0_3, %c0_4] : memref<4x1xf32, #tpu.memory_space<vmem>>, vector<4x1xf32>
    %148 = vector.broadcast %147 : vector<4x1xf32> to vector<4x224xf32>
    %149 = arith.addf %146, %148 : vector<4x224xf32>
    %cst_5 = arith.constant dense<0.000000e+00> : vector<4xf32>
    %150 = vector.multi_reduction <add>, %149, %cst_5 [1] : vector<4x224xf32> to vector<4xf32>
    %151 = vector.shape_cast %150 : vector<4xf32> to vector<4x1xf32>
    %cst_6 = arith.constant 2.240000e+02 : f32
    %152 = vector.broadcast %cst_6 : f32 to vector<4x1xf32>
    %153 = arith.divf %151, %152 : vector<4x1xf32>
    %154 = vector.broadcast %153 : vector<4x1xf32> to vector<4x224xf32>
    %155 = arith.subf %149, %154 : vector<4x224xf32>
    %156 = arith.mulf %155, %155 : vector<4x224xf32>
    %cst_7 = arith.constant dense<0.000000e+00> : vector<4xf32>
    %157 = vector.multi_reduction <add>, %156, %cst_7 [1] : vector<4x224xf32> to vector<4xf32>
    %158 = vector.shape_cast %157 : vector<4xf32> to vector<4x1xf32>
    %cst_8 = arith.constant 2.240000e+02 : f32
    %159 = vector.broadcast %cst_8 : f32 to vector<4x1xf32>
    %160 = arith.divf %158, %159 : vector<4x1xf32>
    %c0_9 = arith.constant 0 : index
    %c0_10 = arith.constant 0 : index
    %161 = vector.load %arg3[%c0_9, %c0_10] : memref<4x1xf32, #tpu.memory_space<vmem>>, vector<4x1xf32>
    %162 = vector.broadcast %153 : vector<4x1xf32> to vector<4x224xf32>
    %163 = arith.subf %149, %162 : vector<4x224xf32>
    %cst_11 = arith.constant 9.99999974E-6 : f32
    %164 = vector.broadcast %cst_11 : f32 to vector<4x1xf32>
    %165 = arith.addf %160, %164 : vector<4x1xf32>
    %166 = math.rsqrt %165 : vector<4x1xf32>
    %167 = vector.broadcast %166 : vector<4x1xf32> to vector<4x224xf32>
    %168 = arith.mulf %163, %167 : vector<4x224xf32>
    %169 = vector.broadcast %161 : vector<4x1xf32> to vector<4x224xf32>
    %170 = arith.mulf %169, %168 : vector<4x224xf32>
    %c0_12 = arith.constant 0 : index
    %c0_13 = arith.constant 0 : index
    %171 = vector.load %arg4[%c0_12, %c0_13] : memref<4x1xf32, #tpu.memory_space<vmem>>, vector<4x1xf32>
    %172 = vector.broadcast %171 : vector<4x1xf32> to vector<4x224xf32>
    %173 = arith.addf %170, %172 : vector<4x224xf32>
    %cst_14 = arith.constant 0.000000e+00 : f32
    %174 = vector.broadcast %cst_14 : f32 to vector<4x224xf32>
    %175 = arith.cmpf oge, %173, %174 : vector<4x224xf32>
    %c0_15 = arith.constant 0 : index
    %c0_16 = arith.constant 0 : index
    %176 = vector.load %arg5[%c0_15, %c0_16] : memref<4x1xf32, #tpu.memory_space<vmem>>, vector<4x1xf32>
    %177 = vector.broadcast %176 : vector<4x1xf32> to vector<4x224xf32>
    %178 = arith.mulf %177, %173 : vector<4x224xf32>
    %179 = arith.select %175, %173, %178 : vector<4x224xi1>, vector<4x224xf32>
    %c0_17 = arith.constant 0 : index
    %c0_18 = arith.constant 0 : index
    %180 = vector.load %arg6[%c0_17, %c0_18] : memref<4x224xf32, #tpu.memory_space<vmem>>, vector<4x224xf32>
    tpu.vector_store %arg6[%c0_17, %c0_18], %179 {strides = array<i32>} : memref<4x224xf32, #tpu.memory_space<vmem>>, vector<4x224xf32>,
    return
  }
}

</mosaic_0001>

<bundles_post_ra>
// kernel: conv2d_unit_forward.1
= control target key start
LH: loop header
LB: loop body
LE: loop exit
PB: predicated region body
PF: predicated region fallthrough
CT: control target
= control target key end

     0   :  { %v537_v0 = vmov 2   ;;  %v538_v1 = vmov 0   ;;  %v539_v3 = vmov 3   ;;  %v540_v4 = vmov 1   ;;  %s770_s0 = inlined_call_operand.vmem [shape: f32[4,24], index: 0, kind: input, shape index: {}]   ;;  %s771_s2 = inlined_call_operand.vmem [shape: f32[4,1], index: 2, kind: input, shape index: {}]   ;;  %s772_s1 = inlined_call_operand.vmem [shape: f32[24,224], index: 1, kind: input, shape index: {}]   ;;  %s773_s4 = inlined_call_operand.vmem [shape: f32[4,1], index: 4, kind: input, shape index: {}]   ;;  %s774_s5 = inlined_call_operand.vmem [shape: f32[4,1], index: 5, kind: input, shape index: {}]   ;;  %s775_s3 = inlined_call_operand.vmem [shape: f32[4,1], index: 3, kind: input, shape index: {}]   ;;  %s776_s6 = inlined_call_operand.vmem [shape: f32[4,224], index: 6, kind: output, shape index: {}]  }
   0x1   :  { %511 = vset.pattern.permute.xlu1 %v537_v0  ;;  %509 = vset.pattern.permute.xlu0 %v538_v1  ;;  %v600_v2 = vld [vmem:[%s770_s0] sm:$0xf]  ;;  %v541_v5 = vmov 4   ;;  %v542_v6 = vmov 5   ;;  %v543_v7 = vmov 6   ;;  %v544_v8 = vmov 8  }
   0x2   :  { %64 = vperm.xlu1 %511, %v600_v2   ;;  %32 = vperm.xlu0 %509, %v600_v2   ;;  %v545_v9 = vmov 7   ;;  %v546_v10 = vmov 11   ;;  %v547_v11 = vmov 9   ;;  %v548_v12 = vmov 14   ;;  %v415_v25 = vld [vmem:[%s771_s2] sm:$0xf] }
   0x3   :  { %v549_v13 = vmov 10   ;;  %v550_v14 = vmov 17   ;;  %v551_v15 = vmov 12   ;;  %v552_v16 = vmov 20   ;;  %v638_v30 = vld [vmem:[%s772_s1] sm:$0xff]  ;;  %v643_v31 = vld [vmem:[%s772_s1 + $0x8] sm:$0xff] }
   0x4   :  { %v553_v17 = vmov 13   ;;  %v554_v18 = vmov 23   ;;  %v555_v19 = vmov 15   ;;  %v556_v20 = vmov 16  }
   0x5   :  { %v557_v21 = vmov 18   ;;  %v558_v22 = vmov 19   ;;  %v559_v23 = vmov 21   ;;  %v560_v24 = vmov 22  }
   0x6   :  { %512 = vset.pattern.permute.xlu1 %v539_v3  ;;  %510 = vset.pattern.permute.xlu0 %v540_v4  ;;  %v35_v26 = vlaneseq  ;;  %vm423_vm0 = vcmask 1043456   ;;  %vm425_vm1 = vcmask 781312   ;;  %vm478_vm2 = vcmask 785412  }
   0x7   :  { %80 = vperm.xlu1 %512, %v600_v2   ;;  %48 = vperm.xlu0 %510, %v600_v2   ;;  %vm479_vm5 = vmor %vm478_vm2, %vm423_vm0 }
   0x8   :  { %v36_v27 = vshrl.u32 %v35_v26, 7 }
   0xa   :  { %v631_v28 = vsub.s32 0, %v36_v27  ;;  %v633_v29 = vsub.s32 1, %v36_v27  ;;  %v645_v32 = vsub.s32 2, %v36_v27  ;;  %v651_v37 = vsub.s32 3, %v36_v27 }
   0xb   :  { %513 = vset.pattern.permute.xlu1 %v541_v5  ;;  %514 = vset.pattern.permute.xlu0 %v542_v6  ;;  %v657_v40 = vsub.s32 4, %v36_v27  ;;  %v663_v47 = vsub.s32 5, %v36_v27  ;;  %v677_v60 = vsub.s32 6, %v36_v27 }
   0xc   :  { %96 = vperm.xlu1 %513, %v600_v2   ;;  %112 = vperm.xlu0 %514, %v600_v2   ;;  %v38_v34 = vrot.slane %v638_v30, %v631_v28  ;;  %v42_v35 = vrot.slane %v643_v31, %v631_v28  ;;  %v54_v38 = vrot.slane %v638_v30, %v633_v29 }
   0xd   :  { %v58_v39 = vrot.slane %v643_v31, %v633_v29  ;;  %v70_v41 = vrot.slane %v638_v30, %v645_v32  ;;  %v74_v42 = vrot.slane %v643_v31, %v645_v32  ;;  %v86_v48 = vrot.slane %v638_v30, %v651_v37 }
   0xe   :  { %v90_v49 = vrot.slane %v643_v31, %v651_v37  ;;  %v102_v52 = vrot.slane %v638_v30, %v657_v40  ;;  %v106_v53 = vrot.slane %v643_v31, %v657_v40  ;;  %v118_v58 = vrot.slane %v638_v30, %v663_v47 }
   0xf   :  { %v122_v59 = vrot.slane %v643_v31, %v663_v47 }
  0x10   :  { %515 = vset.pattern.permute.xlu1 %v543_v7  ;;  %517 = vset.pattern.permute.xlu0 %v544_v8  ;;  %v679_v7 = vsub.s32 7, %v36_v27 }
  0x11   :  { %128 = vperm.xlu1 %515, %v600_v2   ;;  %160 = vperm.xlu0 %517, %v600_v2  }
  0x15   :  { %516 = vset.pattern.permute.xlu1 %v545_v9  ;;  %520 = vset.pattern.permute.xlu0 %v546_v10  ;;  %v134_v10 = vrot.slane %v638_v30, %v677_v60 }
  0x16   :  { %144 = vperm.xlu1 %516, %v600_v2   ;;  %208 = vperm.xlu0 %520, %v600_v2  }
  0x1a   :  { %518 = vset.pattern.permute.xlu1 %v547_v11  ;;  %523 = vset.pattern.permute.xlu0 %v548_v12  ;;  %v138_v11 = vrot.slane %v643_v31, %v677_v60 }
  0x1b   :  { %176 = vperm.xlu1 %518, %v600_v2   ;;  %256 = vperm.xlu0 %523, %v600_v2  }
  0x1f   :  { %519 = vset.pattern.permute.xlu1 %v549_v13  ;;  %526 = vset.pattern.permute.xlu0 %v550_v14 }
  0x20   :  { %192 = vperm.xlu1 %519, %v600_v2   ;;  %304 = vperm.xlu0 %526, %v600_v2  }
  0x24   :  { %521 = vset.pattern.permute.xlu1 %v551_v15  ;;  %529 = vset.pattern.permute.xlu0 %v552_v16  ;;  %v150_v15 = vrot.slane %v638_v30, %v679_v7  ;;  %v154_v16 = vrot.slane %v643_v31, %v679_v7 }
  0x25   :  { %224 = vperm.xlu1 %521, %v600_v2   ;;  %352 = vperm.xlu0 %529, %v600_v2  }
  0x29   :  { %522 = vset.pattern.permute.xlu1 %v553_v17  ;;  %532 = vset.pattern.permute.xlu0 %v554_v18  ;;  %v692_v17 = vld [vmem:[%s772_s1 + $0x10] sm:$0xff]  ;;  %v697_v18 = vld [vmem:[%s772_s1 + $0x18] sm:$0xff] }
  0x2a   :  { %240 = vperm.xlu1 %522, %v600_v2   ;;  %400 = vperm.xlu0 %532, %v600_v2  }
  0x2e   :  { %524 = vset.pattern.permute.xlu1 %v555_v19  ;;  %534 = vset.pattern.permute.xlu0 %v538_v1 }
  0x2f   :  { %272 = vperm.xlu1 %524, %v600_v2  }
  0x33   :  { %525 = vset.pattern.permute.xlu1 %v556_v20 }
  0x34   :  { %288 = vperm.xlu1 %525, %v600_v2  }
  0x38   :  { %527 = vset.pattern.permute.xlu1 %v557_v21 }
  0x39   :  { %320 = vperm.xlu1 %527, %v600_v2  }
  0x3d   :  { %528 = vset.pattern.permute.xlu1 %v558_v22 }
  0x3e   :  { %336 = vperm.xlu1 %528, %v600_v2  }
  0x42   :  { %530 = vset.pattern.permute.xlu1 %v559_v23  ;;  %v166_v23 = vrot.slane %v692_v17, %v631_v28 }
  0x43   :  { %368 = vperm.xlu1 %530, %v600_v2  }
  0x47   :  { %531 = vset.pattern.permute.xlu1 %v560_v24  ;;  %v170_v24 = vrot.slane %v697_v18, %v631_v28 }
  0x48   :  { %384 = vperm.xlu1 %531, %v600_v2  }
  0x4c   :  { %533 = vset.pattern.permute.xlu1 %v538_v1 }
  0x4d   :  { %418 = vperm.xlu1 %533, %v415_v25  }
  0x81   :  { %v65_v33 = vpop.permute.xlu1 %64  ;;  %v33_v36 = vpop.permute.xlu0 %32 }
  0x82   :  { %v43_v43 = vmul.f32 %v38_v34, %v33_v36  ;;  %v44_v44 = vmul.f32 %v42_v35, %v33_v36  ;;  %v75_v54 = vmul.f32 %v70_v41, %v65_v33  ;;  %v76_v55 = vmul.f32 %v74_v42, %v65_v33 }
  0x83   :  { %v182_v34 = vrot.slane %v692_v17, %v633_v29  ;;  %v186_v35 = vrot.slane %v697_v18, %v633_v29 }
  0x86   :  { %v81_v45 = vpop.permute.xlu1 %80  ;;  %v49_v46 = vpop.permute.xlu0 %48 }
  0x87   :  { %v59_v50 = vmul.f32 %v54_v38, %v49_v46  ;;  %v60_v51 = vmul.f32 %v58_v39, %v49_v46  ;;  %v91_v61 = vmul.f32 %v86_v48, %v81_v45  ;;  %v92_v62 = vmul.f32 %v90_v49, %v81_v45 }
  0x89   :  { %v61_v56 = vadd.f32 %v59_v50, %v43_v43  ;;  %v62_v57 = vadd.f32 %v60_v51, %v44_v44  ;;  %v198_v43 = vrot.slane %v692_v17, %v645_v32  ;;  %v202_v44 = vrot.slane %v697_v18, %v645_v32 }
  0x8a   :  { %v214_v50 = vrot.slane %v692_v17, %v651_v37  ;;  %v218_v51 = vrot.slane %v697_v18, %v651_v37 }
  0x8b   :  { %v77_v63 = vadd.f32 %v75_v54, %v61_v56  ;;  %v78_v0 = vadd.f32 %v76_v55, %v62_v57  ;;  %v97_v1 = vpop.permute.xlu1 %96  ;;  %v113_v2 = vpop.permute.xlu0 %112 }
  0x8c   :  { %v107_v3 = vmul.f32 %v102_v52, %v97_v1  ;;  %v108_v4 = vmul.f32 %v106_v53, %v97_v1  ;;  %v123_v8 = vmul.f32 %v118_v58, %v113_v2  ;;  %v124_v9 = vmul.f32 %v122_v59, %v113_v2 }
  0x8d   :  { %v93_v5 = vadd.f32 %v91_v61, %v77_v63  ;;  %v94_v6 = vadd.f32 %v92_v62, %v78_v0  ;;  %v230_v58 = vrot.slane %v692_v17, %v657_v40  ;;  %v234_v59 = vrot.slane %v697_v18, %v657_v40 }
  0x8e   :  { %v246_v2 = vrot.slane %v692_v17, %v663_v47 }
  0x8f   :  { %v109_v12 = vadd.f32 %v107_v3, %v93_v5  ;;  %v110_v13 = vadd.f32 %v108_v4, %v94_v6  ;;  %v250_v3 = vrot.slane %v697_v18, %v663_v47 }
  0x90   :  { %v129_v14 = vpop.permute.xlu1 %128  ;;  %v161_v26 = vpop.permute.xlu0 %160 }
  0x91   :  { %v125_v19 = vadd.f32 %v123_v8, %v109_v12  ;;  %v126_v20 = vadd.f32 %v124_v9, %v110_v13  ;;  %v139_v21 = vmul.f32 %v134_v10, %v129_v14  ;;  %v140_v22 = vmul.f32 %v138_v11, %v129_v14 }
  0x92   :  { %v171_v39 = vmul.f32 %v166_v23, %v161_v26  ;;  %v172_v41 = vmul.f32 %v170_v24, %v161_v26  ;;  %v262_v9 = vrot.slane %v692_v17, %v677_v60  ;;  %v266_v10 = vrot.slane %v697_v18, %v677_v60  ;;  %v29_v26 = vld [vmem:[%s772_s1 + $0x28] sm:$0xff] }
  0x93   :  { %v141_v27 = vadd.f32 %v139_v21, %v125_v19  ;;  %v142_v30 = vadd.f32 %v140_v22, %v126_v20  ;;  %v278_v19 = vrot.slane %v692_v17, %v679_v7  ;;  %v282_v20 = vrot.slane %v697_v18, %v679_v7 }
  0x94   :  { %v298_v17 = vrot.slane %v29_v26, %v631_v28 }
  0x95   :  { %v145_v25 = vpop.permute.xlu1 %144  ;;  %v209_v53 = vpop.permute.xlu0 %208 }
  0x96   :  { %v155_v31 = vmul.f32 %v150_v15, %v145_v25  ;;  %v156_v33 = vmul.f32 %v154_v16, %v145_v25  ;;  %v219_v63 = vmul.f32 %v214_v50, %v209_v53  ;;  %v220_v0 = vmul.f32 %v218_v51, %v209_v53  ;;  %v28_v25 = vld [vmem:[%s772_s1 + $0x20] sm:$0xff] }
  0x97   :  { %v346_v53 = vrot.slane %v29_v26, %v651_v37 }
  0x98   :  { %v157_v36 = vadd.f32 %v155_v31, %v141_v27  ;;  %v158_v38 = vadd.f32 %v156_v33, %v142_v30  ;;  %v294_v30 = vrot.slane %v28_v25, %v631_v28 }
  0x9a   :  { %v177_v42 = vpop.permute.xlu1 %176  ;;  %v173_v45 = vadd.f32 %v171_v39, %v157_v36  ;;  %v174_v46 = vadd.f32 %v172_v41, %v158_v38  ;;  %v257_v12 = vpop.permute.xlu0 %256  ;;  %v314_v36 = vrot.slane %v29_v26, %v633_v29 }
  0x9b   :  { %v187_v48 = vmul.f32 %v182_v34, %v177_v42  ;;  %v188_v49 = vmul.f32 %v186_v35, %v177_v42  ;;  %v267_v23 = vmul.f32 %v262_v9, %v257_v12  ;;  %v268_v24 = vmul.f32 %v266_v10, %v257_v12 }
  0x9c   :  { %v310_v35 = vrot.slane %v28_v25, %v633_v29  ;;  %v394_v9 = vrot.slane %v29_v26, %v677_v60  ;;  %v410_v10 = vrot.slane %v29_v26, %v679_v7 }
  0x9d   :  { %v189_v54 = vadd.f32 %v187_v48, %v173_v45  ;;  %v190_v55 = vadd.f32 %v188_v49, %v174_v46  ;;  %v326_v45 = vrot.slane %v28_v25, %v645_v32  ;;  %v330_v46 = vrot.slane %v29_v26, %v645_v32 }
  0x9f   :  { %v193_v52 = vpop.permute.xlu1 %192  ;;  %v305_v39 = vpop.permute.xlu0 %304 }
  0xa0   :  { %v203_v56 = vmul.f32 %v198_v43, %v193_v52  ;;  %v204_v57 = vmul.f32 %v202_v44, %v193_v52  ;;  %v315_v49 = vmul.f32 %v310_v35, %v305_v39  ;;  %v316_v50 = vmul.f32 %v314_v36, %v305_v39 }
  0xa1   :  { %v342_v52 = vrot.slane %v28_v25, %v651_v37 }
  0xa2   :  { %v205_v61 = vadd.f32 %v203_v56, %v189_v54  ;;  %v206_v62 = vadd.f32 %v204_v57, %v190_v55  ;;  %v358_v57 = vrot.slane %v28_v25, %v657_v40 }
  0xa4   :  { %v225_v1 = vpop.permute.xlu1 %224  ;;  %v221_v4 = vadd.f32 %v219_v63, %v205_v61  ;;  %v222_v5 = vadd.f32 %v220_v0, %v206_v62  ;;  %v353_v61 = vpop.permute.xlu0 %352 }
  0xa5   :  { %v235_v6 = vmul.f32 %v230_v58, %v225_v1  ;;  %v236_v8 = vmul.f32 %v234_v59, %v225_v1  ;;  %v362_v58 = vrot.slane %v29_v26, %v657_v40  ;;  %v374_v1 = vrot.slane %v28_v25, %v663_v47 }
  0xa6   :  { %v406_v40 = vrot.slane %v28_v25, %v679_v7 }
  0xa7   :  { %v237_v13 = vadd.f32 %v235_v6, %v221_v4  ;;  %v238_v14 = vadd.f32 %v236_v8, %v222_v5  ;;  %v363_v4 = vmul.f32 %v358_v57, %v353_v61  ;;  %v364_v5 = vmul.f32 %v362_v58, %v353_v61 }
  0xa8   :  { %v390_v8 = vrot.slane %v28_v25, %v677_v60 }
  0xa9   :  { %v241_v11 = vpop.permute.xlu1 %240 }
  0xaa   :  { %v251_v15 = vmul.f32 %v246_v2, %v241_v11  ;;  %v252_v16 = vmul.f32 %v250_v3, %v241_v11  ;;  %v378_v2 = vrot.slane %v29_v26, %v663_v47 }
  0xac   :  { %v253_v21 = vadd.f32 %v251_v15, %v237_v13  ;;  %v254_v22 = vadd.f32 %v252_v16, %v238_v14  ;;  %v401_v15 = vpop.permute.xlu0 %400 }
  0xad   :  { %v411_v47 = vmul.f32 %v406_v40, %v401_v15 }
  0xae   :  { %v273_v27 = vpop.permute.xlu1 %272  ;;  %v269_v31 = vadd.f32 %v267_v23, %v253_v21  ;;  %v270_v33 = vadd.f32 %v268_v24, %v254_v22 }
  0xaf   :  { %v283_v18 = vmul.f32 %v278_v19, %v273_v27  ;;  %v284_v34 = vmul.f32 %v282_v20, %v273_v27  ;;  %v412_v19 = vmul.f32 %v410_v10, %v401_v15 }
  0xb1   :  { %v285_v41 = vadd.f32 %v283_v18, %v269_v31  ;;  %v286_v42 = vadd.f32 %v284_v34, %v270_v33  ;;  %v454_v18 = vld [vmem:[%s773_s4] sm:$0xf] }
  0xb2   :  { %v464_v34 = vld [vmem:[%s774_s5] sm:$0xf] }
  0xb3   :  { %v289_v38 = vpop.permute.xlu1 %288 }
  0xb4   :  { %v299_v43 = vmul.f32 %v294_v30, %v289_v38  ;;  %v300_v44 = vmul.f32 %v298_v17, %v289_v38 }
  0xb6   :  { %v301_v48 = vadd.f32 %v299_v43, %v285_v41  ;;  %v302_v28 = vadd.f32 %v300_v44, %v286_v42 }
  0xb8   :  { %v321_v51 = vpop.permute.xlu1 %320  ;;  %v317_v29 = vadd.f32 %v315_v49, %v301_v48  ;;  %v318_v54 = vadd.f32 %v316_v50, %v302_v28 }
  0xb9   :  { %v331_v55 = vmul.f32 %v326_v45, %v321_v51  ;;  %v332_v56 = vmul.f32 %v330_v46, %v321_v51  ;;  %v442_v46 = vld [vmem:[%s775_s3] sm:$0xf] }
  0xbb   :  { %v333_v32 = vadd.f32 %v331_v55, %v317_v29  ;;  %v334_v62 = vadd.f32 %v332_v56, %v318_v54 }
  0xbd   :  { %v337_v59 = vpop.permute.xlu1 %336 }
  0xbe   :  { %v347_v63 = vmul.f32 %v342_v52, %v337_v59  ;;  %v348_v0 = vmul.f32 %v346_v53, %v337_v59 }
  0xc0   :  { %v349_v3 = vadd.f32 %v347_v63, %v333_v32  ;;  %v350_v37 = vadd.f32 %v348_v0, %v334_v62 }
  0xc2   :  { %v369_v6 = vpop.permute.xlu1 %368  ;;  %v365_v11 = vadd.f32 %v363_v4, %v349_v3  ;;  %v366_v12 = vadd.f32 %v364_v5, %v350_v37 }
  0xc3   :  { %v379_v13 = vmul.f32 %v374_v1, %v369_v6  ;;  %v380_v14 = vmul.f32 %v378_v2, %v369_v6 }
  0xc5   :  { %v381_v20 = vadd.f32 %v379_v13, %v365_v11  ;;  %v382_v21 = vadd.f32 %v380_v14, %v366_v12 }
  0xc7   :  { %v385_v16 = vpop.permute.xlu1 %384 }
  0xc8   :  { %v395_v22 = vmul.f32 %v390_v8, %v385_v16  ;;  %v396_v23 = vmul.f32 %v394_v9, %v385_v16 }
  0xca   :  { %v397_v24 = vadd.f32 %v395_v22, %v381_v20  ;;  %v398_v27 = vadd.f32 %v396_v23, %v382_v21 }
  0xcc   :  { %v419_v30 = vpop.permute.xlu1 %418  ;;  %v413_v60 = vadd.f32 %v411_v47, %v397_v24  ;;  %v414_v17 = vadd.f32 %v412_v19, %v398_v27 }
  0xce   :  { %v421_v7 = vadd.f32 %v419_v30, %v413_v60  ;;  %v422_v25 = vadd.f32 %v419_v30, %v414_v17 }
  0xd0   :  { %v424_v26 = vsel %vm423_vm0, %v421_v7, 0.0  ;;  %v426_v31 = vsel %vm425_vm1, %v422_v25, 0.0 }
  0xd1   :  { %v427_v33 = vadd.f32 %v426_v31, %v424_v26 }
  0xd3   :  { %428 = vadd.xlane.f32.xlu1 %v427_v33 }
  0xe4   :  { %457 = vperm.xlu1 %533, %v454_v18  }
  0xe8   :  { %467 = vperm.xlu1 %533, %v464_v34  }
 0x160   :  { %v429_v35 = vpop.xlane.xlu1 %428 }
 0x161   :  { %v431_v36 = vmul.f32 0.004464286, %v429_v35 }
 0x163   :  { %v432_v38 = vsub.f32 %v421_v7, %v431_v36  ;;  %v433_v39 = vsub.f32 %v422_v25, %v431_v36 }
 0x164   :  { %v458_v51 = vpop.permute.xlu1 %457 }
 0x165   :  { %v434_v41 = vmul.f32 %v432_v38, %v432_v38  ;;  %v435_v42 = vmul.f32 %v433_v39, %v433_v39 }
 0x167   :  { %v436_v43 = vsel %vm423_vm0, %v434_v41, 0.0  ;;  %v437_v44 = vsel %vm425_vm1, %v435_v42, 0.0 }
 0x168   :  { %v438_v45 = vadd.f32 %v437_v44, %v436_v43  ;;  %v468_v58 = vpop.permute.xlu1 %467 }
 0x16a   :  { %439 = vadd.xlane.f32.xlu0 %v438_v45 }
 0x180   :  { %449 = vperm.xlu0 %534, %v442_v46  }
 0x1f7   :  { %v440_v48 = vpop.xlane.xlu0 %439 }
 0x1f8   :  { %v441_v28 = vmul.f32 0.004464286, %v440_v48 }
 0x1fa   :  { %v443_v49 = vadd.f32 1e-05, %v441_v28 }
 0x1fc   :  { %535 = vrsqrt.f32 %v443_v49 }
 0x1ff   :  { %v450_v52 = vpop.permute.xlu0 %449 }
 0x206   :  { %v536_v50 = vpop.eup %535 }
 0x207   :  { %v445_v53 = vmul.f32 %v536_v50, %v432_v38  ;;  %v446_v29 = vmul.f32 %v536_v50, %v433_v39 }
 0x209   :  { %v452_v54 = vmul.f32 %v450_v52, %v445_v53  ;;  %v453_v55 = vmul.f32 %v450_v52, %v446_v29 }
 0x20b   :  { %v460_v56 = vadd.f32 %v458_v51, %v452_v54  ;;  %v461_v57 = vadd.f32 %v458_v51, %v453_v55 }
 0x20d   :  { %vm462_vm3 = vcmp.ge.f32.partialorder %v460_v56, 0.0  ;;  %vm463_vm4 = vcmp.ge.f32.partialorder %v461_v57, 0.0  ;;  %v470_v59 = vmul.f32 %v468_v58, %v460_v56  ;;  %v471_v61 = vmul.f32 %v468_v58, %v461_v57 }
 0x20f   :  { %v472_v32 = vsel %vm462_vm3, %v460_v56, %v470_v59  ;;  %v473_v62 = vsel %vm463_vm4, %v461_v57, %v471_v61 }
 0x210   :  { %v476_v63 = vcombine.low %v472_v32, %v473_v62 }
 0x212   :  { %480 = vst.msk [vmem:[%s776_s6] sm:$0xff] %vm479_vm5, %v476_v63 }

</bundles_post_ra>
